<compile_context>
chip_gen: v6e
topology: v6e:2x2x1
jax: 0.10.0
libtpu: 0.0.40
codegen_flags: <defaults>
</compile_context>

<pallas_src>
import jax
import jax.numpy as jnp
from jax.experimental import pallas as pl
from jax.experimental.pallas import tpu as pltpu

NEG_MASK_VALUE = -100000.0
LANE = 128


def _round_up(v, m):
    return ((v + m - 1) // m) * m


def _pad2(a, rows, cols):
    return jnp.pad(a, ((0, rows - a.shape[0]), (0, cols - a.shape[1])))


# --------------------------------------------------------------------------
# Fused Pallas kernel: GraphCNN -> mean pool -> one-hot gather -> head
# --------------------------------------------------------------------------
def _atarinet_fused_kernel(cand_ref,                     # int32 [B*J, 1] absolute node ids
                           x_ref,                        # bf16  [N, Dp]
                           adj_ref,                      # bf16  [B, n_per, n_per]
                           maskadd_ref,                  # f32   [B*J, Ap] additive mask
                           w_ref,                        # bf16  [7, 128, 128] weight stack
                           b_ref,                        # f32   [6+J+1, 128] bias stack
                           logits_ref, pi_ref, baseline_ref):
    B, n_per, _ = adj_ref.shape
    BJ, Ap = maskadd_ref.shape
    J = BJ // B
    N, _ = x_ref.shape
    Hp = w_ref.shape[2]
    bf16, f32 = jnp.bfloat16, jnp.float32

    adj = adj_ref[...]                                   # bf16, 0/1 -> exact
    x = x_ref[...]                                       # bf16

    # packed biases ([1,128] rows) + baseline weights
    b00 = b_ref[pl.ds(0, 1), :]
    b01 = b_ref[pl.ds(1, 1), :]
    b10 = b_ref[pl.ds(2, 1), :]
    b11 = b_ref[pl.ds(3, 1), :]
    fcb = b_ref[pl.ds(4, 1), :]
    pb = b_ref[pl.ds(5, 1), :]
    bw3 = b_ref[pl.ds(6, J), :]                          # [J, Fp]
    bb = b_ref[pl.ds(6 + J, 1), :][:, :1]                # [1, 1]

    def gin_layer(h_bf, w_a, b_a, w_b, b_b):
        # adj @ (h @ W): reassociated so the n_per x n_per matmul has a 128-wide output.
        hw = jnp.dot(h_bf, w_a, preferred_element_type=f32)                 # [N, Hp]
        pooled = jnp.einsum('bij,bjh->bih', adj,
                            hw.reshape(B, n_per, Hp).astype(bf16),
                            preferred_element_type=f32)                     # [B, n, Hp]
        t = jnp.maximum(pooled.reshape(N, Hp) + b_a, 0.0)
        rep = jnp.dot(t.astype(bf16), w_b, preferred_element_type=f32) + b_b
        return jnp.maximum(rep, 0.0)      # BatchNorm1d (eval, default init) == identity

    # ---- GraphCNN: 2 GIN layers ----
    h = gin_layer(x, w_ref[0], b00, w_ref[1], b01)
    h = gin_layer(h.astype(bf16), w_ref[2], b10, w_ref[3], b11)             # [N, Hp] f32
    h_bf = h.astype(bf16)

    # ---- candidate gather as one-hot matmul (no per-row dynamic copies) ----
    cand = cand_ref[...]                                                     # [BJ, 1]
    one_hot = (jax.lax.broadcasted_iota(jnp.int32, (BJ, N), 1) == cand).astype(bf16)
    cand_feat = jnp.dot(one_hot, h_bf, preferred_element_type=f32)           # [BJ, Hp]

    # ---- graph-level mean pooling: sum per graph; 1/n_per is folded into fcw_p ----
    h_pool = jnp.sum(h.reshape(B, n_per, Hp), axis=1)                        # [B, Hp]

    # ---- fc(2H->32)+relu without materializing the concat (split weight halves) ----
    cand_term = jnp.dot(cand_feat.astype(bf16), w_ref[4],
                        preferred_element_type=f32)                          # [BJ, Fp]
    pool_term = jnp.dot(h_pool.astype(bf16), w_ref[5],
                        preferred_element_type=f32)                          # [B, Fp]
    Fp = cand_term.shape[-1]
    x2 = jnp.maximum(cand_term.reshape(B, J, Fp) + pool_term[:, None, :] + fcb, 0.0)

    # ---- policy logits + additive mask fill ----
    logits = jnp.dot(x2.reshape(BJ, Fp).astype(bf16), w_ref[6],
                     preferred_element_type=f32) + pb                        # [BJ, Ap]
    logits = logits + maskadd_ref[...]
    logits_ref[...] = logits                                                 # pol_log

    # ---- pi = softmax(policy_logits, dim=1) over the job (J) axis ----
    l3 = logits.reshape(B, J, Ap)
    m = jnp.max(l3, axis=1, keepdims=True)
    e = jnp.exp(l3 - m)
    denom = jnp.sum(e, axis=1, keepdims=True)
    pi_ref[...] = (e / denom).reshape(BJ, Ap)

    # ---- baseline = Linear(J*32 -> 1)(core_output.view(B, -1)) ----
    prod = x2 * bw3[None, :, :]                                              # [B, J, Fp]
    baseline_ref[...] = jnp.sum(jnp.sum(prod, axis=2), axis=1, keepdims=True) + bb


# --------------------------------------------------------------------------
# pallas_call wrapper (full AtariNet.forward, use_lstm=False, eval mode)
# --------------------------------------------------------------------------
def _vmem():
    return pl.BlockSpec(memory_space=pltpu.MemorySpace.VMEM)


def atari_net_forward(padded, x, graph_pool, adj, candidate, mask,
                      n_j, n_m, num_actions):
    # graph_pool accepted for interface parity; the kernel computes the graph
    # mean pooling in place (identical to the L2D "average" pooling matrix).
    del graph_pool
    B = candidate.shape[0]
    J = n_j
    n_per = n_j * n_m
    BJ = B * J
    w_stack, b_stack = padded["w_stack"], padded["b_stack"]
    Dp = w_stack.shape[1]
    Ap = _round_up(num_actions, LANE)

    # node features: lane-pad (exact) + bf16
    x_p = jnp.pad(x.astype(jnp.float32),
                  ((0, 0), (0, Dp - x.shape[1]))).astype(jnp.bfloat16)

    # batched adjacency: the batch is a disjoint union of graphs, so the dense
    # adj is block-diagonal; take its B diagonal blocks (or accept blocks directly).
    if adj.ndim == 2:
        adj_b = adj.reshape(B, n_per, B, n_per)[jnp.arange(B), :, jnp.arange(B), :]
    else:
        adj_b = adj
    adj_b = adj_b.astype(jnp.bfloat16)               # 0/1 adjacency -> exact in bf16

    # additive action mask (0 / NEG_MASK_VALUE), lane padded, sublane-dense layout
    mask_add = jnp.where(mask.reshape(B, J, num_actions), NEG_MASK_VALUE, 0.0)
    mask_add = jnp.pad(mask_add, ((0, 0), (0, 0), (0, Ap - num_actions)))
    mask_add = mask_add.reshape(BJ, Ap).astype(jnp.float32)

    # absolute candidate node ids (candidate holds graph-local ids)
    cand_abs = (candidate.astype(jnp.int32)
                + (jnp.arange(B, dtype=jnp.int32) * n_per)[:, None]).reshape(BJ, 1)

    logits_p, pi_p, baseline = pl.pallas_call(
        _atarinet_fused_kernel,
        out_shape=(jax.ShapeDtypeStruct((BJ, Ap), jnp.float32),   # masked logits
                   jax.ShapeDtypeStruct((BJ, Ap), jnp.float32),   # pi
                   jax.ShapeDtypeStruct((B, 1), jnp.float32)),    # baseline
        in_specs=[_vmem()] * 6,
        out_specs=(_vmem(), _vmem(), _vmem()),
    )(cand_abs, x_p, adj_b, mask_add, w_stack, b_stack)

    logits = logits_p.reshape(B, J, Ap)[:, :, :num_actions]       # strip lane padding
    pi = pi_p.reshape(B, J, Ap)[:, :, :num_actions]

    # TODO(synk): select_action / greedy_select_action / torch.multinomial /
    # Categorical.log_prob are external helpers not defined in the module;
    # action / action_P / heur are left as None (eval path).
    out = dict(policy_logits=jnp.squeeze(pi),
               baseline=jnp.squeeze(baseline),
               action=None,
               action_P=None,
               pol_log=jnp.squeeze(logits),
               heur=None)
    return out, []              # core_state == [] for use_lstm=False


# --------------------------------------------------------------------------
# Parameter init (PyTorch Linear-style uniform bounds) + packed/padded prep
# --------------------------------------------------------------------------
def init_params(key, input_dim, hidden_dim, n_j, num_actions, fc_out=32):
    ks = jax.random.split(key, 14)

    def w(k, shape, fan_in):
        bound = 1.0 / (fan_in ** 0.5)
        return jax.random.uniform(k, shape, jnp.float32, -bound, bound)

    return {
        # GraphCNN: GIN layer 0 MLP (input_dim->hidden->hidden)
        "w00": w(ks[0], (input_dim, hidden_dim), input_dim),
        "b00": w(ks[1], (1, hidden_dim), input_dim),
        "w01": w(ks[2], (hidden_dim, hidden_dim), hidden_dim),
        "b01": w(ks[3], (1, hidden_dim), hidden_dim),
        # GraphCNN: GIN layer 1 MLP (hidden->hidden->hidden)
        "w10": w(ks[4], (hidden_dim, hidden_dim), hidden_dim),
        "b10": w(ks[5], (1, hidden_dim), hidden_dim),
        "w11": w(ks[6], (hidden_dim, hidden_dim), hidden_dim),
        "b11": w(ks[7], (1, hidden_dim), hidden_dim),
        # fc = Linear(2*hidden, 32)
        "fcw": w(ks[8], (2 * hidden_dim, fc_out), 2 * hidden_dim),
        "fcb": w(ks[9], (1, fc_out), 2 * hidden_dim),
        # policy = Linear(32, num_actions)
        "pw": w(ks[10], (fc_out, num_actions), fc_out),
        "pb": w(ks[11], (1, num_actions), fc_out),
        # baseline = Linear(n_j*32, 1)
        "bw": w(ks[12], (n_j * fc_out, 1), n_j * fc_out),
        "bb": w(ks[13], (1, 1), n_j * fc_out),
    }


def pad_params(params, n_j, n_m, input_dim, hidden_dim, num_actions, fc_out=32):
    """Zero-pad feature dims to 128 lanes (exact), split the fc weight, fold the
    mean-pool scale into the pooled half, and pack everything into two stacks."""
    Dp = _round_up(input_dim, LANE)
    Hp = _round_up(hidden_dim, LANE)
    Fp = _round_up(fc_out, LANE)
    Ap = _round_up(num_actions, LANE)
    assert Dp == Hp == Fp == Ap == LANE, "weight stacking assumes 128-wide padded dims"
    n_per = n_j * n_m

    fcw_c = params["fcw"][:hidden_dim]                    # candidate-feature half
    fcw_p = params["fcw"][hidden_dim:] / float(n_per)     # pooled half (mean folded in)
    # baseline weight in core_output.view(B, -1) order: index = j*fc_out + k
    bw3 = params["bw"][:, 0].reshape(n_j, fc_out)

    w_stack = jnp.stack([
        _pad2(params["w00"], LANE, LANE),
        _pad2(params["w01"], LANE, LANE),
        _pad2(params["w10"], LANE, LANE),
        _pad2(params["w11"], LANE, LANE),
        _pad2(fcw_c, LANE, LANE),
        _pad2(fcw_p, LANE, LANE),
        _pad2(params["pw"], LANE, LANE),
    ]).astype(jnp.bfloat16)

    b_stack = jnp.concatenate([
        _pad2(params["b00"], 1, LANE),
        _pad2(params["b01"], 1, LANE),
        _pad2(params["b10"], 1, LANE),
        _pad2(params["b11"], 1, LANE),
        _pad2(params["fcb"], 1, LANE),
        _pad2(params["pb"], 1, LANE),
        _pad2(bw3, n_j, LANE),
        _pad2(params["bb"], 1, LANE),
    ], axis=0).astype(jnp.float32)

    return {"w_stack": w_stack, "b_stack": b_stack}


# --------------------------------------------------------------------------
if __name__ == "__main__":
    B, n_j, n_m = 2, 4, 4               # batch, jobs, machines
    input_dim, hidden_dim = 2, 32       # GraphCNN dims
    num_actions = 4
    fc_out = 32
    n_per = n_j * n_m
    N = B * n_per                       # total graph nodes across the batch

    key = jax.random.PRNGKey(0)
    k_par, k_x, k_adj, k_mask = jax.random.split(key, 4)
    params = init_params(k_par, input_dim, hidden_dim, n_j, num_actions, fc_out)
    padded = pad_params(params, n_j, n_m, input_dim, hidden_dim, num_actions, fc_out)

    # node features [N, input_dim]
    x = jax.random.normal(k_x, (N, input_dim), jnp.float32)
    # per-graph 0/1 adjacency with self loops; dense batch adjacency is block-diagonal
    adj_blocks = (jax.random.uniform(k_adj, (B, n_per, n_per)) < 0.2).astype(jnp.float32)
    adj_blocks = jnp.maximum(adj_blocks, jnp.eye(n_per, dtype=jnp.float32)[None])
    adj = jax.scipy.linalg.block_diag(*[adj_blocks[i] for i in range(B)])   # [N, N]
    # graph_pool: mean pooling matrix [B, N] (interface parity; mean is in-kernel)
    graph_pool = jnp.repeat(jnp.eye(B, dtype=jnp.float32), n_per, axis=1) / n_per
    # candidate operations: first op of each job, per batch element (graph-local ids)
    candidate = jnp.tile(jnp.arange(n_j, dtype=jnp.int32)[None, :] * n_m, (B, 1))
    # boolean action mask (reshaped/padded to policy_logits size inside the wrapper)
    mask = jax.random.uniform(k_mask, (B, n_j * num_actions)) < 0.2

    fwd = jax.jit(atari_net_forward, static_argnums=(6, 7, 8))
    out, core_state = fwd(padded, x, graph_pool, adj, candidate, mask,
                          n_j, n_m, num_actions)
    jax.block_until_ready((out["policy_logits"], out["baseline"], out["pol_log"]))
    assert out["policy_logits"].shape == (B, n_j, num_actions)
    assert out["baseline"].shape == (B,)
    assert out["pol_log"].shape == (B, n_j, num_actions)
    print("KERNEL_OK")
</pallas_src>

<mosaic_0001>
module attributes {stable_mosaic.version = 11 : i64} {
  func.func @_atarinet_fused_kernel(%arg0: memref<8x1xi32, #tpu.memory_space<vmem>>, %arg1: memref<32x128xbf16, #tpu.memory_space<vmem>>, %arg2: memref<2x16x16xbf16, #tpu.memory_space<vmem>>, %arg3: memref<8x128xf32, #tpu.memory_space<vmem>>, %arg4: memref<7x128x128xbf16, #tpu.memory_space<vmem>>, %arg5: memref<11x128xf32, #tpu.memory_space<vmem>>, %arg6: memref<8x128xf32, #tpu.memory_space<vmem>>, %arg7: memref<8x128xf32, #tpu.memory_space<vmem>>, %arg8: memref<2x1xf32, #tpu.memory_space<vmem>>) attributes {dimension_semantics = [], scalar_prefetch = 0 : i64, scratch_operands = 0 : i64, tpu.core_type = #tpu.core_type<tc>} {
    %c0 = arith.constant 0 : index
    %c0_0 = arith.constant 0 : index
    %c0_1 = arith.constant 0 : index
    %0 = vector.load %arg2[%c0, %c0_0, %c0_1] : memref<2x16x16xbf16, #tpu.memory_space<vmem>>, vector<2x16x16xbf16>
    %c0_2 = arith.constant 0 : index
    %c0_3 = arith.constant 0 : index
    %1 = vector.load %arg1[%c0_2, %c0_3] : memref<32x128xbf16, #tpu.memory_space<vmem>>, vector<32x128xbf16>
    %c0_4 = arith.constant 0 : index
    %c0_5 = arith.constant 0 : index
    %2 = vector.load %arg5[%c0_4, %c0_5] : memref<11x128xf32, #tpu.memory_space<vmem>>, vector<1x128xf32>
    %c1 = arith.constant 1 : index
    %c0_6 = arith.constant 0 : index
    %3 = vector.load %arg5[%c1, %c0_6] : memref<11x128xf32, #tpu.memory_space<vmem>>, vector<1x128xf32>
    %c2 = arith.constant 2 : index
    %c0_7 = arith.constant 0 : index
    %4 = vector.load %arg5[%c2, %c0_7] : memref<11x128xf32, #tpu.memory_space<vmem>>, vector<1x128xf32>
    %c3 = arith.constant 3 : index
    %c0_8 = arith.constant 0 : index
    %5 = vector.load %arg5[%c3, %c0_8] : memref<11x128xf32, #tpu.memory_space<vmem>>, vector<1x128xf32>
    %c4 = arith.constant 4 : index
    %c0_9 = arith.constant 0 : index
    %6 = vector.load %arg5[%c4, %c0_9] : memref<11x128xf32, #tpu.memory_space<vmem>>, vector<1x128xf32>
    %c5 = arith.constant 5 : index
    %c0_10 = arith.constant 0 : index
    %7 = vector.load %arg5[%c5, %c0_10] : memref<11x128xf32, #tpu.memory_space<vmem>>, vector<1x128xf32>
    %c6 = arith.constant 6 : index
    %c0_11 = arith.constant 0 : index
    %8 = vector.load %arg5[%c6, %c0_11] : memref<11x128xf32, #tpu.memory_space<vmem>>, vector<4x128xf32>
    %c10 = arith.constant 10 : index
    %c0_12 = arith.constant 0 : index
    %9 = vector.load %arg5[%c10, %c0_12] : memref<11x128xf32, #tpu.memory_space<vmem>>, vector<1x128xf32>
    %10 = vector.extract_strided_slice %9 {offsets = [0, 0], sizes = [1, 1], strides = [1, 1]} : vector<1x128xf32> to vector<1x1xf32>
    %c0_13 = arith.constant 0 : index
    %c0_14 = arith.constant 0 : index
    %c0_15 = arith.constant 0 : index
    %11 = vector.load %arg4[%c0_13, %c0_14, %c0_15] : memref<7x128x128xbf16, #tpu.memory_space<vmem>>, vector<1x128x128xbf16>
    %12 = vector.shape_cast %11 : vector<1x128x128xbf16> to vector<128x128xbf16>
    %c1_16 = arith.constant 1 : index
    %c0_17 = arith.constant 0 : index
    %c0_18 = arith.constant 0 : index
    %13 = vector.load %arg4[%c1_16, %c0_17, %c0_18] : memref<7x128x128xbf16, #tpu.memory_space<vmem>>, vector<1x128x128xbf16>
    %14 = vector.shape_cast %13 : vector<1x128x128xbf16> to vector<128x128xbf16>
    %cst = arith.constant dense<0.000000e+00> : vector<32x128xf32>
    %15 = tpu.matmul %1, %12, %cst {dimension_numbers = #tpu.dot_dimension_numbers<[1], [0], [0], [1], [0, 0, 1, 1], [], []>} : vector<32x128xbf16>, vector<128x128xbf16>, vector<32x128xf32> -> vector<32x128xf32>
    %16 = vector.shape_cast %15 : vector<32x128xf32> to vector<2x16x128xf32>
    %17 = arith.truncf %16 : vector<2x16x128xf32> to vector<2x16x128xbf16>
    "tpu.trace_start"() <{level = 10 : i32, message = "bij,bjh->bih"}> : () -> ()
    %cst_19 = arith.constant dense<0.000000e+00> : vector<2x16x128xf32>
    %18 = tpu.matmul %0, %17, %cst_19 {dimension_numbers = #tpu.dot_dimension_numbers<[2], [1], [1], [2], [0, 0, 0, 1, 1, 2], [0], [0]>} : vector<2x16x16xbf16>, vector<2x16x128xbf16>, vector<2x16x128xf32> -> vector<2x16x128xf32>
    "tpu.trace_stop"() : () -> ()
    %19 = vector.shape_cast %18 : vector<2x16x128xf32> to vector<32x128xf32>
    %20 = vector.broadcast %2 : vector<1x128xf32> to vector<32x128xf32>
    %21 = arith.addf %19, %20 : vector<32x128xf32>
    %cst_20 = arith.constant 0.000000e+00 : f32
    %22 = vector.broadcast %cst_20 : f32 to vector<32x128xf32>
    %23 = arith.maximumf %21, %22 : vector<32x128xf32>
    %24 = arith.truncf %23 : vector<32x128xf32> to vector<32x128xbf16>
    %cst_21 = arith.constant dense<0.000000e+00> : vector<32x128xf32>
    %25 = tpu.matmul %24, %14, %cst_21 {dimension_numbers = #tpu.dot_dimension_numbers<[1], [0], [0], [1], [0, 0, 1, 1], [], []>} : vector<32x128xbf16>, vector<128x128xbf16>, vector<32x128xf32> -> vector<32x128xf32>
    %26 = vector.broadcast %3 : vector<1x128xf32> to vector<32x128xf32>
    %27 = arith.addf %25, %26 : vector<32x128xf32>
    %cst_22 = arith.constant 0.000000e+00 : f32
    %28 = vector.broadcast %cst_22 : f32 to vector<32x128xf32>
    %29 = arith.maximumf %27, %28 : vector<32x128xf32>
    %30 = arith.truncf %29 : vector<32x128xf32> to vector<32x128xbf16>
    %c2_23 = arith.constant 2 : index
    %c0_24 = arith.constant 0 : index
    %c0_25 = arith.constant 0 : index
    %31 = vector.load %arg4[%c2_23, %c0_24, %c0_25] : memref<7x128x128xbf16, #tpu.memory_space<vmem>>, vector<1x128x128xbf16>
    %32 = vector.shape_cast %31 : vector<1x128x128xbf16> to vector<128x128xbf16>
    %c3_26 = arith.constant 3 : index
    %c0_27 = arith.constant 0 : index
    %c0_28 = arith.constant 0 : index
    %33 = vector.load %arg4[%c3_26, %c0_27, %c0_28] : memref<7x128x128xbf16, #tpu.memory_space<vmem>>, vector<1x128x128xbf16>
    %34 = vector.shape_cast %33 : vector<1x128x128xbf16> to vector<128x128xbf16>
    %cst_29 = arith.constant dense<0.000000e+00> : vector<32x128xf32>
    %35 = tpu.matmul %30, %32, %cst_29 {dimension_numbers = #tpu.dot_dimension_numbers<[1], [0], [0], [1], [0, 0, 1, 1], [], []>} : vector<32x128xbf16>, vector<128x128xbf16>, vector<32x128xf32> -> vector<32x128xf32>
    %36 = vector.shape_cast %35 : vector<32x128xf32> to vector<2x16x128xf32>
    %37 = arith.truncf %36 : vector<2x16x128xf32> to vector<2x16x128xbf16>
    "tpu.trace_start"() <{level = 10 : i32, message = "bij,bjh->bih"}> : () -> ()
    %cst_30 = arith.constant dense<0.000000e+00> : vector<2x16x128xf32>
    %38 = tpu.matmul %0, %37, %cst_30 {dimension_numbers = #tpu.dot_dimension_numbers<[2], [1], [1], [2], [0, 0, 0, 1, 1, 2], [0], [0]>} : vector<2x16x16xbf16>, vector<2x16x128xbf16>, vector<2x16x128xf32> -> vector<2x16x128xf32>
    "tpu.trace_stop"() : () -> ()
    %39 = vector.shape_cast %38 : vector<2x16x128xf32> to vector<32x128xf32>
    %40 = vector.broadcast %4 : vector<1x128xf32> to vector<32x128xf32>
    %41 = arith.addf %39, %40 : vector<32x128xf32>
    %cst_31 = arith.constant 0.000000e+00 : f32
    %42 = vector.broadcast %cst_31 : f32 to vector<32x128xf32>
    %43 = arith.maximumf %41, %42 : vector<32x128xf32>
    %44 = arith.truncf %43 : vector<32x128xf32> to vector<32x128xbf16>
    %cst_32 = arith.constant dense<0.000000e+00> : vector<32x128xf32>
    %45 = tpu.matmul %44, %34, %cst_32 {dimension_numbers = #tpu.dot_dimension_numbers<[1], [0], [0], [1], [0, 0, 1, 1], [], []>} : vector<32x128xbf16>, vector<128x128xbf16>, vector<32x128xf32> -> vector<32x128xf32>
    %46 = vector.broadcast %5 : vector<1x128xf32> to vector<32x128xf32>
    %47 = arith.addf %45, %46 : vector<32x128xf32>
    %cst_33 = arith.constant 0.000000e+00 : f32
    %48 = vector.broadcast %cst_33 : f32 to vector<32x128xf32>
    %49 = arith.maximumf %47, %48 : vector<32x128xf32>
    %50 = arith.truncf %49 : vector<32x128xf32> to vector<32x128xbf16>
    %c0_34 = arith.constant 0 : index
    %c0_35 = arith.constant 0 : index
    %51 = vector.load %arg0[%c0_34, %c0_35] : memref<8x1xi32, #tpu.memory_space<vmem>>, vector<8x1xi32>
    %52 = tpu.iota {dimensions = array<i32: 1>} : vector<8x32xi32>
    %53 = vector.broadcast %51 : vector<8x1xi32> to vector<8x32xi32>
    %54 = arith.cmpi eq, %52, %53 : vector<8x32xi32>
    %55 = arith.extui %54 : vector<8x32xi1> to vector<8x32xi32>
    %56 = arith.sitofp %55 : vector<8x32xi32> to vector<8x32xf32>
    %57 = arith.truncf %56 : vector<8x32xf32> to vector<8x32xbf16>
    %cst_36 = arith.constant dense<0.000000e+00> : vector<8x128xf32>
    %58 = tpu.matmul %57, %50, %cst_36 {dimension_numbers = #tpu.dot_dimension_numbers<[1], [0], [0], [1], [0, 0, 1, 1], [], []>} : vector<8x32xbf16>, vector<32x128xbf16>, vector<8x128xf32> -> vector<8x128xf32>
    %59 = vector.shape_cast %49 : vector<32x128xf32> to vector<2x16x128xf32>
    %cst_37 = arith.constant dense<0.000000e+00> : vector<2x128xf32>
    %60 = vector.multi_reduction <add>, %59, %cst_37 [1] : vector<2x16x128xf32> to vector<2x128xf32>
    %61 = arith.truncf %58 : vector<8x128xf32> to vector<8x128xbf16>
    %c4_38 = arith.constant 4 : index
    %c0_39 = arith.constant 0 : index
    %c0_40 = arith.constant 0 : index
    %62 = vector.load %arg4[%c4_38, %c0_39, %c0_40] : memref<7x128x128xbf16, #tpu.memory_space<vmem>>, vector<1x128x128xbf16>
    %63 = vector.shape_cast %62 : vector<1x128x128xbf16> to vector<128x128xbf16>
    %cst_41 = arith.constant dense<0.000000e+00> : vector<8x128xf32>
    %64 = tpu.matmul %61, %63, %cst_41 {dimension_numbers = #tpu.dot_dimension_numbers<[1], [0], [0], [1], [0, 0, 1, 1], [], []>} : vector<8x128xbf16>, vector<128x128xbf16>, vector<8x128xf32> -> vector<8x128xf32>
    %65 = arith.truncf %60 : vector<2x128xf32> to vector<2x128xbf16>
    %c5_42 = arith.constant 5 : index
    %c0_43 = arith.constant 0 : index
    %c0_44 = arith.constant 0 : index
    %66 = vector.load %arg4[%c5_42, %c0_43, %c0_44] : memref<7x128x128xbf16, #tpu.memory_space<vmem>>, vector<1x128x128xbf16>
    %67 = vector.shape_cast %66 : vector<1x128x128xbf16> to vector<128x128xbf16>
    %cst_45 = arith.constant dense<0.000000e+00> : vector<2x128xf32>
    %68 = tpu.matmul %65, %67, %cst_45 {dimension_numbers = #tpu.dot_dimension_numbers<[1], [0], [0], [1], [0, 0, 1, 1], [], []>} : vector<2x128xbf16>, vector<128x128xbf16>, vector<2x128xf32> -> vector<2x128xf32>
    %69 = vector.shape_cast %64 : vector<8x128xf32> to vector<2x4x128xf32>
    %70 = vector.shape_cast %68 : vector<2x128xf32> to vector<2x1x128xf32>
    %71 = vector.broadcast %70 : vector<2x1x128xf32> to vector<2x4x128xf32>
    %72 = arith.addf %69, %71 : vector<2x4x128xf32>
    %73 = vector.shape_cast %6 : vector<1x128xf32> to vector<1x1x128xf32>
    %74 = vector.broadcast %73 : vector<1x1x128xf32> to vector<2x4x128xf32>
    %75 = arith.addf %72, %74 : vector<2x4x128xf32>
    %cst_46 = arith.constant 0.000000e+00 : f32
    %76 = vector.broadcast %cst_46 : f32 to vector<2x4x128xf32>
    %77 = arith.maximumf %75, %76 : vector<2x4x128xf32>
    %78 = vector.shape_cast %77 : vector<2x4x128xf32> to vector<8x128xf32>
    %79 = arith.truncf %78 : vector<8x128xf32> to vector<8x128xbf16>
    %c6_47 = arith.constant 6 : index
    %c0_48 = arith.constant 0 : index
    %c0_49 = arith.constant 0 : index
    %80 = vector.load %arg4[%c6_47, %c0_48, %c0_49] : memref<7x128x128xbf16, #tpu.memory_space<vmem>>, vector<1x128x128xbf16>
    %81 = vector.shape_cast %80 : vector<1x128x128xbf16> to vector<128x128xbf16>
    %cst_50 = arith.constant dense<0.000000e+00> : vector<8x128xf32>
    %82 = tpu.matmul %79, %81, %cst_50 {dimension_numbers = #tpu.dot_dimension_numbers<[1], [0], [0], [1], [0, 0, 1, 1], [], []>} : vector<8x128xbf16>, vector<128x128xbf16>, vector<8x128xf32> -> vector<8x128xf32>
    %83 = vector.broadcast %7 : vector<1x128xf32> to vector<8x128xf32>
    %84 = arith.addf %82, %83 : vector<8x128xf32>
    %c0_51 = arith.constant 0 : index
    %c0_52 = arith.constant 0 : index
    %85 = vector.load %arg3[%c0_51, %c0_52] : memref<8x128xf32, #tpu.memory_space<vmem>>, vector<8x128xf32>
    %86 = arith.addf %84, %85 : vector<8x128xf32>
    %c0_53 = arith.constant 0 : index
    %c0_54 = arith.constant 0 : index
    %87 = vector.load %arg6[%c0_53, %c0_54] : memref<8x128xf32, #tpu.memory_space<vmem>>, vector<8x128xf32>
    tpu.vector_store %arg6[%c0_53, %c0_54], %86 {strides = array<i32>} : memref<8x128xf32, #tpu.memory_space<vmem>>, vector<8x128xf32>,
    %88 = vector.shape_cast %86 : vector<8x128xf32> to vector<2x4x128xf32>
    %cst_55 = arith.constant dense<0xFF800000> : vector<2x128xf32>
    %89 = vector.multi_reduction <maximumf>, %88, %cst_55 [1] : vector<2x4x128xf32> to vector<2x128xf32>
    %90 = vector.shape_cast %89 : vector<2x128xf32> to vector<2x1x128xf32>
    %91 = vector.broadcast %90 : vector<2x1x128xf32> to vector<2x4x128xf32>
    %92 = arith.subf %88, %91 : vector<2x4x128xf32>
    %93 = math.exp %92 : vector<2x4x128xf32>
    %cst_56 = arith.constant dense<0.000000e+00> : vector<2x128xf32>
    %94 = vector.multi_reduction <add>, %93, %cst_56 [1] : vector<2x4x128xf32> to vector<2x128xf32>
    %95 = vector.shape_cast %94 : vector<2x128xf32> to vector<2x1x128xf32>
    %96 = vector.broadcast %95 : vector<2x1x128xf32> to vector<2x4x128xf32>
    %97 = arith.divf %93, %96 : vector<2x4x128xf32>
    %98 = vector.shape_cast %97 : vector<2x4x128xf32> to vector<8x128xf32>
    %c0_57 = arith.constant 0 : index
    %c0_58 = arith.constant 0 : index
    %99 = vector.load %arg7[%c0_57, %c0_58] : memref<8x128xf32, #tpu.memory_space<vmem>>, vector<8x128xf32>
    tpu.vector_store %arg7[%c0_57, %c0_58], %98 {strides = array<i32>} : memref<8x128xf32, #tpu.memory_space<vmem>>, vector<8x128xf32>,
    %100 = vector.shape_cast %8 : vector<4x128xf32> to vector<1x4x128xf32>
    %101 = vector.broadcast %100 : vector<1x4x128xf32> to vector<2x4x128xf32>
    %102 = arith.mulf %77, %101 : vector<2x4x128xf32>
    %cst_59 = arith.constant dense<0.000000e+00> : vector<2x4xf32>
    %103 = vector.multi_reduction <add>, %102, %cst_59 [2] : vector<2x4x128xf32> to vector<2x4xf32>
    %cst_60 = arith.constant dense<0.000000e+00> : vector<2xf32>
    %104 = vector.multi_reduction <add>, %103, %cst_60 [1] : vector<2x4xf32> to vector<2xf32>
    %105 = vector.shape_cast %104 : vector<2xf32> to vector<2x1xf32>
    %106 = vector.broadcast %10 : vector<1x1xf32> to vector<2x1xf32>
    %107 = arith.addf %105, %106 : vector<2x1xf32>
    %c0_61 = arith.constant 0 : index
    %c0_62 = arith.constant 0 : index
    %108 = vector.load %arg8[%c0_61, %c0_62] : memref<2x1xf32, #tpu.memory_space<vmem>>, vector<2x1xf32>
    tpu.vector_store %arg8[%c0_61, %c0_62], %107 {strides = array<i32>} : memref<2x1xf32, #tpu.memory_space<vmem>>, vector<2x1xf32>,
    return
  }
}

</mosaic_0001>

<bundles_post_ra>
// kernel: atari_net_forward.1
= control target key start
LH: loop header
LB: loop body
LE: loop exit
PB: predicated region body
PF: predicated region fallthrough
CT: control target
= control target key end

     0   :  { %14 = vsyncpa [#allocation3], 0  ;;  %s1970_s0 = inlined_call_operand.vmem [shape: s32[8,1], index: 0, kind: input, shape index: {}]   ;;  %s1971_s1 = inlined_call_operand.vmem [shape: bf16[32,128], index: 1, kind: input, shape index: {}]   ;;  %s1972_s2 = inlined_call_operand.vmem [shape: bf16[2,16,16], index: 2, kind: input, shape index: {}]   ;;  %s1973_s3 = inlined_call_operand.vmem [shape: f32[8,128], index: 3, kind: input, shape index: {}]   ;;  %s1974_s4 = inlined_call_operand.hbm [shape: bf16[7,128,128], index: 4, kind: input, shape index: {}]   ;;  %s1975_s5 = inlined_call_operand.vmem [shape: f32[11,128], index: 5, kind: input, shape index: {}]   ;;  %s1976_s6 = inlined_call_operand.hbm [shape: f32[8,128], index: 6, kind: output, shape index: {0}]   ;;  %s1977_s7 = inlined_call_operand.hbm [shape: f32[8,128], index: 7, kind: output, shape index: {1}]   ;;  %s1978_s8 = inlined_call_operand.vmem [shape: f32[2,1], index: 8, kind: output, shape index: {2}]  }
   0x1   :  { %15 = vsyncpa [#allocation4], 0 }
   0x2   :  { %16 = vsyncpa [#allocation7], 0  ;;  %s1789_s27 = smov [#allocation2]  }
   0x3   :  { %s30_s28 = sshll.u32 %s1789_s27, 4  ;;  %s31_s28 = int_to_ptr.vmem [resolvable:$true] %s30_s28 }
   0x4   :  { %s1731_s29 = scalar_lea.vmem %s31_s28, 7168  ;;  %p1736_p1 = scmp.lt.s32.totalorder %s31_s28, %s31_s28 }
   0x5   :  { %p1732_p0 = scmp.ne.s32.totalorder %s31_s28, %s1731_s29  ;;  %p1737_p2 = scmp.lt.s32.totalorder %s1731_s29, %s1731_s29 }
   0x7   :  { %p1738_p3 = por %p1737_p2, %p1736_p1 }
   0x9   :  { %p1739_p4 = pnand %p1738_p3, %p1732_p0 }
   0xb   :  { %1742 = shalt.err (!%p1739_p4)
}
   0xc   :  { %s1790_s30 = smov 64   ;;  %s1791_s9 = smov 4  }
   0xd   :  { %36 = dma.hbm_to_vmem [thread:$0]  %s1974_s4, 7168, %s31_s28, [#allocation3], %s1790_s30, %s1790_s30, %s1791_s9  }
   0xe   :  { %1783 = dma.done.wait [#allocation3], 7168  }
   0xf   :  { %1784 = vsyncadd [#allocation3], 4294960128  ;;  %v1655_v0 = vld [vmem:[#allocation2 + $0x38] sm:$0xff]   ;;  %v1656_v1 = vld [vmem:[#allocation2 + $0x30] sm:$0xff]   ;;  %v1792_v10 = vmov 0.0   ;;  %vm1793_vm0 = vmmov 0  }
  0x10   :  { %1473 = vmatprep.subr.bf16.mxu0 %v1655_v0  ;;  %v1657_v2 = vld [vmem:[#allocation2 + $0x28] sm:$0xff]   ;;  %v1658_v3 = vld [vmem:[#allocation2 + $0x20] sm:$0xff]   ;;  %v1659_v5 = vld [vmem:[#allocation2 + $0x18] sm:$0xff]   ;;  %1493 = vmatprep.subr.bf16.mxu1 %v1792_v10  ;;  %vm208_vm1 = vcmask 130048   ;;  %vm769_vm3 = vcmask 261120   ;;  %vm956_vm4 = vcmask 1041409  }
  0x11   :  { %1474 = vmatpush3.bf16.msra.mxu0 %v1655_v0  ;;  %v1663_v4 = vld [vmem:[%s1971_s1] sm:$0xff]   ;;  %v1660_v6 = vld [vmem:[#allocation2 + $0x10] sm:$0xff]   ;;  %v1661_v7 = vld [vmem:[#allocation2 + $0x8] sm:$0xff]   ;;  %1495 = vmatprep.mubr.msk.bf16.mxu1 %vm1793_vm0, %v1792_v10  ;;  %vm1214_vm5 = vcmask 1043456   ;;  %vm1278_vm6 = vcmask 25600   ;;  %s1796_s12 = smov [#allocation5]  }
  0x12   :  { %1475 = vmatprep.subr.bf16.mxu0 %v1656_v1  ;;  %1489 = vmatprep.mubr.bf16.mxu0 %v1663_v4  ;;  %v1662_v8 = vld [vmem:[#allocation2] sm:$0xff]   ;;  %v1664_v9 = vld [vmem:[%s1971_s1 + $0x8] sm:$0xff]   ;;  %v1667_v17 = vld [vmem:[#allocation2 + $0x78] sm:$0xff]   ;;  %s1295_s13 = sshll.u32 %s1796_s12, 4  ;;  %s1296_s13 = int_to_ptr.vmem [resolvable:$true] %s1295_s13 }
  0x13   :  { %v1858_v16 = vld [vmem:[%s1972_s2] sm:$0xff]   ;;  %v1868_v19 = vld [vmem:[%s1972_s2 + $0x8] sm:$0xff]   ;;  %v1668_v20 = vld [vmem:[#allocation2 + $0x70] sm:$0xff]   ;;  %s1743_s4 = scalar_lea.vmem %s1296_s13, 128  ;;  %p1748_p6 = scmp.lt.s32.totalorder %s1296_s13, %s1296_s13 }
  0x14   :  { %v1669_v21 = vld [vmem:[#allocation2 + $0x68] sm:$0xff]   ;;  %v1670_v22 = vld [vmem:[#allocation2 + $0x60] sm:$0xff]   ;;  %v1671_v23 = vld [vmem:[#allocation2 + $0x58] sm:$0xff]   ;;  %p1744_p5 = scmp.ne.s32.totalorder %s1296_s13, %s1743_s4  ;;  %p1749_p7 = scmp.lt.s32.totalorder %s1743_s4, %s1743_s4 }
  0x15   :  { %1476 = vmatpush3.bf16.msra.mxu0 %v1656_v1  ;;  %v1672_v24 = vld [vmem:[#allocation2 + $0x50] sm:$0xff]   ;;  %v1673_v25 = vld [vmem:[#allocation2 + $0x48] sm:$0xff]   ;;  %v1674_v26 = vld [vmem:[#allocation2 + $0x40] sm:$0xff]  }
  0x16   :  { %1477 = vmatprep.subr.bf16.mxu0 %v1657_v2  ;;  %v1675_v27 = vld [vmem:[#allocation2 + $0xb8] sm:$0xff]   ;;  %v1676_v28 = vld [vmem:[#allocation2 + $0xb0] sm:$0xff]   ;;  %v1677_v29 = vld [vmem:[#allocation2 + $0xa8] sm:$0xff]   ;;  %p1750_p8 = por %p1749_p7, %p1748_p6 }
  0x17   :  { %v1678_v30 = vld [vmem:[#allocation2 + $0xa0] sm:$0xff]   ;;  %v1679_v31 = vld [vmem:[#allocation2 + $0x98] sm:$0xff]   ;;  %v1680_v51 = vld [vmem:[#allocation2 + $0x90] sm:$0xff]  }
  0x18   :  { %v1336_v32 = vld [vmem:[%s1975_s5] ss:$0 sm:$0xff]  ;;  %v1681_v52 = vld [vmem:[#allocation2 + $0x88] sm:$0xff]   ;;  %v1337_v56 = vld [vmem:[%s1975_s5 + $0x1] ss:$0 sm:$0xff]  ;;  %p1751_p9 = pnand %p1750_p8, %p1744_p5 }
  0x19   :  { %1478 = vmatpush3.bf16.msra.mxu0 %v1657_v2  ;;  %v1682_v53 = vld [vmem:[#allocation2 + $0x80] sm:$0xff]  }
  0x1a   :  { %1479 = vmatprep.subr.bf16.mxu0 %v1658_v3 }
  0x1d   :  { %1480 = vmatpush3.bf16.msra.mxu0 %v1658_v3 }
  0x1e   :  { %1481 = vmatprep.subr.bf16.mxu0 %v1659_v5 }
  0x21   :  { %1482 = vmatpush3.bf16.msra.mxu0 %v1659_v5 }
  0x22   :  { %1483 = vmatprep.subr.bf16.mxu0 %v1660_v6 }
  0x25   :  { %1484 = vmatpush3.bf16.msra.mxu0 %v1660_v6 }
  0x26   :  { %1485 = vmatprep.subr.bf16.mxu0 %v1661_v7 }
  0x29   :  { %1486 = vmatpush3.bf16.msra.mxu0 %v1661_v7 }
  0x2a   :  { %1487 = vmatprep.subr.bf16.mxu0 %v1662_v8 }
  0x2d   :  { %1488 = vmatpush3.bf16.msra.mxu0 %v1662_v8 }
  0x2e   :  { %1525 = vmatprep.subr.bf16.mxu0 %v1675_v27 }
  0x30   :  { %1490 = vmatmul.mubr.bf16.vlgmr.msra.gmra.mxu0 %v1664_v9 }
  0x31   :  { %1526 = vmatpush3.bf16.msra.mxu0 %v1675_v27 }
  0x32   :  { %1527 = vmatprep.subr.bf16.mxu0 %v1676_v28 }
  0x35   :  { %1528 = vmatpush3.bf16.msra.mxu0 %v1676_v28 }
  0x36   :  { %1529 = vmatprep.subr.bf16.mxu0 %v1677_v29 }
  0x39   :  { %1530 = vmatpush3.bf16.msra.mxu0 %v1677_v29 }
  0x3a   :  { %1531 = vmatprep.subr.bf16.mxu0 %v1678_v30 }
  0x3d   :  { %1532 = vmatpush3.bf16.msra.mxu0 %v1678_v30 }
  0x3e   :  { %1533 = vmatprep.subr.bf16.mxu0 %v1679_v31 }
  0x41   :  { %1534 = vmatpush3.bf16.msra.mxu0 %v1679_v31 }
  0x42   :  { %1535 = vmatprep.subr.bf16.mxu0 %v1680_v51 }
  0x45   :  { %1536 = vmatpush3.bf16.msra.mxu0 %v1680_v51 }
  0x46   :  { %1537 = vmatprep.subr.bf16.mxu0 %v1681_v52 }
  0x49   :  { %1538 = vmatpush3.bf16.msra.mxu0 %v1681_v52 }
  0x4a   :  { %1539 = vmatprep.subr.bf16.mxu0 %v1682_v53 }
  0x4d   :  { %1540 = vmatpush3.bf16.msra.mxu0 %v1682_v53 }
  0x4e   :  { %1585 = vmatprep.subr.bf16.mxu0 %v1792_v10 }
  0xf0   :  { %v1491_v11 = vpop.f32.mrf.mxu0 }
  0xf2   :  { %v186_v12 = vpop.f32.mrf.mxu0 }
  0xf4   :  { %v1492_v13 = vpop.f32.mrf.mxu0 }
  0xf5   :  { %v202_v18 = vpack.c.bf16 %v1492_v13, %v1491_v11  ;;  %v1683_v11 = vld [vmem:[#allocation2 + $0xf8] sm:$0xff]   ;;  %v1684_v13 = vld [vmem:[#allocation2 + $0xf0] sm:$0xff]  }
  0xf6   :  { %v189_v14 = vpop.f32.mrf.mxu0 }
  0xf7   :  { %v201_v15 = vpack.c.bf16 %v189_v14, %v186_v12  ;;  %v1685_v14 = vld [vmem:[#allocation2 + $0xe8] sm:$0xff]  }
  0xf9   :  { %1494 = vmatpush3.bf16.msra.mxu1 %v201_v15  ;;  %v1686_v15 = vld [vmem:[#allocation2 + $0xe0] sm:$0xff]  }
  0xfa   :  { %1499 = vmatprep.subr.bf16.mxu1 %v1792_v10 }
  0xfc   :  { %1496 = vmatmul.mubr.msk.bf16.vlgmr.msra.gmra.mxu1 %vm208_vm1, %v1858_v16 }
  0xfd   :  { %1500 = vmatpush3.bf16.msra.mxu1 %v202_v18  ;;  %1501 = vmatprep.mubr.msk.bf16.mxu1 %vm1793_vm0, %v1792_v10  ;;  %v1689_v18 = vld [vmem:[#allocation2 + $0xc8] sm:$0xff]  }
  0xfe   :  { %1505 = vmatprep.subr.bf16.mxu1 %v1667_v17 }
 0x104   :  { %1502 = vmatmul.mubr.msk.bf16.vlgmr.msra.gmra.mxu1 %vm208_vm1, %v1868_v19 }
 0x105   :  { %1506 = vmatpush3.bf16.msra.mxu1 %v1667_v17  ;;  %v1687_v17 = vld [vmem:[#allocation2 + $0xd8] sm:$0xff]  }
 0x106   :  { %1507 = vmatprep.subr.bf16.mxu1 %v1668_v20 }
 0x109   :  { %1508 = vmatpush3.bf16.msra.mxu1 %v1668_v20  ;;  %v1690_v20 = vld [vmem:[#allocation2 + $0xc0] sm:$0xff]  }
 0x10a   :  { %1509 = vmatprep.subr.bf16.mxu1 %v1669_v21 }
 0x10d   :  { %1510 = vmatpush3.bf16.msra.mxu1 %v1669_v21  ;;  %v1794_v21 = vmov 0  }
 0x10e   :  { %1511 = vmatprep.subr.bf16.mxu1 %v1670_v22  ;;  %1654 = vset.pattern.permute.xlu0 %v1794_v21  ;;  %v1695_v21 = vld [vmem:[#allocation2 + $0x158] sm:$0xff]  }
 0x111   :  { %1512 = vmatpush3.bf16.msra.mxu1 %v1670_v22  ;;  %v1356_v22 = vld [vmem:[%s1975_s5 + $0x2] ss:$0 sm:$0xff] }
 0x112   :  { %1513 = vmatprep.subr.bf16.mxu1 %v1671_v23 }
 0x115   :  { %1514 = vmatpush3.bf16.msra.mxu1 %v1671_v23 }
 0x116   :  { %1515 = vmatprep.subr.bf16.mxu1 %v1672_v24 }
 0x119   :  { %1516 = vmatpush3.bf16.msra.mxu1 %v1672_v24 }
 0x11a   :  { %1517 = vmatprep.subr.bf16.mxu1 %v1673_v25 }
 0x11d   :  { %1518 = vmatpush3.bf16.msra.mxu1 %v1673_v25 }
 0x11e   :  { %1519 = vmatprep.subr.bf16.mxu1 %v1674_v26 }
 0x121   :  { %1520 = vmatpush3.bf16.msra.mxu1 %v1674_v26 }
 0x122   :  { %1545 = vmatprep.subr.bf16.mxu1 %v1792_v10 }
 0x1bc   :  { %v246_v33 = vpop.f32.mrf.mxu1 }
 0x1bd   :  { %v306_v35 = vadd.f32 %v1336_v32, %v246_v33 }
 0x1be   :  { %v1497_v34 = vpop.f32.mrf.mxu1 }
 0x1bf   :  { %v310_v39 = vmax.f32 %v306_v35, 0.0 }
 0x1c0   :  { %v249_v36 = vpop.f32.mrf.mxu1 }
 0x1c1   :  { %v307_v37 = vadd.f32 %v1336_v32, %v249_v36 }
 0x1c2   :  { %v1498_v38 = vpop.f32.mrf.mxu1 }
 0x1c3   :  { %v311_v40 = vmax.f32 %v307_v37, 0.0 }
 0x1c4   :  { %v295_v41 = vpop.f32.mrf.mxu1 }
 0x1c5   :  { %v314_v42 = vpack.c.bf16 %v311_v40, %v310_v39  ;;  %v308_v44 = vadd.f32 %v1336_v32, %v295_v41  ;;  %v1699_v41 = vld [vmem:[#allocation2 + $0x138] sm:$0xff]  }
 0x1c6   :  { %v1503_v43 = vpop.f32.mrf.mxu1 }
 0x1c7   :  { %1521 = vmatprep.mubr.bf16.mxu1 %v314_v42  ;;  %v312_v48 = vmax.f32 %v308_v44, 0.0  ;;  %v1700_v42 = vld [vmem:[#allocation2 + $0x130] sm:$0xff]   ;;  %v1701_v43 = vld [vmem:[#allocation2 + $0x128] sm:$0xff]   ;;  %v1702_v44 = vld [vmem:[#allocation2 + $0x120] sm:$0xff]  }
 0x1c8   :  { %v298_v45 = vpop.f32.mrf.mxu1 }
 0x1c9   :  { %v309_v46 = vadd.f32 %v1336_v32, %v298_v45  ;;  %v1703_v45 = vld [vmem:[#allocation2 + $0x118] sm:$0xff]  }
 0x1ca   :  { %v1504_v47 = vpop.f32.mrf.mxu1 }
 0x1cb   :  { %v313_v49 = vmax.f32 %v309_v46, 0.0  ;;  %v1704_v46 = vld [vmem:[#allocation2 + $0x110] sm:$0xff]   ;;  %v1705_v47 = vld [vmem:[#allocation2 + $0x108] sm:$0xff]  }
 0x1cd   :  { %v315_v50 = vpack.c.bf16 %v313_v49, %v312_v48  ;;  %v1357_v49 = vld [vmem:[%s1975_s5 + $0x3] ss:$0 sm:$0xff] }
 0x1cf   :  { %1522 = vmatmul.mubr.bf16.vlgmr.msra.gmra.mxu1 %v315_v50  ;;  %v760_v50 = vlaneseq }
 0x1d0   :  { %1547 = vmatprep.mubr.msk.bf16.mxu1 %vm1793_vm0, %v1792_v10 }
 0x28f   :  { %v1523_v54 = vpop.f32.mrf.mxu1 }
 0x290   :  { %v411_v60 = vadd.f32 %v1523_v54, %v1337_v56  ;;  %v1911_v54 = vand.u32 127, %v760_v50 }
 0x291   :  { %v402_v55 = vpop.f32.mrf.mxu1 }
 0x292   :  { %v403_v58 = vadd.f32 %v1337_v56, %v402_v55  ;;  %v419_v2 = vmax.f32 %v411_v60, 0.0 }
 0x293   :  { %v1524_v57 = vpop.f32.mrf.mxu1 }
 0x294   :  { %v414_v59 = vadd.f32 %v1524_v57, %v1337_v56  ;;  %v417_v0 = vmax.f32 %v403_v58, 0.0 }
 0x295   :  { %v405_v61 = vpop.f32.mrf.mxu1 }
 0x296   :  { %v406_v62 = vadd.f32 %v1337_v56, %v405_v61  ;;  %v420_v63 = vmax.f32 %v414_v59, 0.0 }
 0x298   :  { %v418_v1 = vmax.f32 %v406_v62, 0.0  ;;  %v422_v4 = vpack.c.bf16 %v420_v63, %v419_v2 }
 0x29a   :  { %v421_v3 = vpack.c.bf16 %v418_v1, %v417_v0 }
 0x29c   :  { %1541 = vmatprep.mubr.bf16.mxu0 %v421_v3 }
 0x29d   :  { %1542 = vmatmul.mubr.bf16.vlgmr.msra.gmra.mxu0 %v422_v4 }
 0x29e   :  { %1601 = vmatprep.mubr.msk.bf16.mxu0 %vm1793_vm0, %v1792_v10  ;;  %1586 = vmatpush3.bf16.msra.mxu0 %v1699_v41  ;;  %v1709_v41 = vld [vmem:[#allocation2 + $0x1a8] sm:$0xff]  }
 0x29f   :  { %1587 = vmatprep.subr.bf16.mxu0 %v1792_v10 }
 0x2a2   :  { %1588 = vmatpush3.bf16.msra.mxu0 %v1700_v42  ;;  %v1710_v42 = vld [vmem:[#allocation2 + $0x1a0] sm:$0xff]  }
 0x2a3   :  { %1589 = vmatprep.subr.bf16.mxu0 %v1792_v10 }
 0x2a6   :  { %1590 = vmatpush3.bf16.msra.mxu0 %v1701_v43  ;;  %v1711_v43 = vld [vmem:[#allocation2 + $0x198] sm:$0xff]  }
 0x2a7   :  { %1591 = vmatprep.subr.bf16.mxu0 %v1792_v10 }
 0x2aa   :  { %1592 = vmatpush3.bf16.msra.mxu0 %v1702_v44 }
 0x2ab   :  { %1593 = vmatprep.subr.bf16.mxu0 %v1792_v10 }
 0x2ae   :  { %1594 = vmatpush3.bf16.msra.mxu0 %v1703_v45 }
 0x2af   :  { %1595 = vmatprep.subr.bf16.mxu0 %v1792_v10 }
 0x2b2   :  { %1596 = vmatpush3.bf16.msra.mxu0 %v1704_v46 }
 0x2b3   :  { %1597 = vmatprep.subr.bf16.mxu0 %v1792_v10 }
 0x2b6   :  { %1598 = vmatpush3.bf16.msra.mxu0 %v1705_v47 }
 0x2b7   :  { %1599 = vmatprep.subr.bf16.mxu0 %v1792_v10 }
 0x35d   :  { %v1543_v5 = vpop.f32.mrf.mxu0 }
 0x35f   :  { %v539_v6 = vpop.f32.mrf.mxu0 }
 0x361   :  { %v1544_v7 = vpop.f32.mrf.mxu0 }
 0x362   :  { %v555_v12 = vpack.c.bf16 %v1544_v7, %v1543_v5 }
 0x363   :  { %v542_v8 = vpop.f32.mrf.mxu0 }
 0x364   :  { %v554_v9 = vpack.c.bf16 %v542_v8, %v539_v6  ;;  %v1691_v8 = vld [vmem:[#allocation2 + $0x178] sm:$0xff]  }
 0x366   :  { %1546 = vmatpush3.bf16.msra.mxu1 %v554_v9 }
 0x367   :  { %1551 = vmatprep.subr.bf16.mxu1 %v1792_v10 }
 0x369   :  { %1548 = vmatmul.mubr.msk.bf16.vlgmr.msra.gmra.mxu1 %vm208_vm1, %v1858_v16  ;;  %v1688_v16 = vld [vmem:[#allocation2 + $0xd0] sm:$0xff]  }
 0x36a   :  { %1552 = vmatpush3.bf16.msra.mxu1 %v555_v12  ;;  %1553 = vmatprep.mubr.msk.bf16.mxu1 %vm1793_vm0, %v1792_v10  ;;  %v1692_v12 = vld [vmem:[#allocation2 + $0x170] sm:$0xff]  }
 0x36b   :  { %1557 = vmatprep.subr.bf16.mxu1 %v1683_v11 }
 0x371   :  { %1554 = vmatmul.mubr.msk.bf16.vlgmr.msra.gmra.mxu1 %vm208_vm1, %v1868_v19  ;;  %v759_v19 = vld [vmem:[%s1970_s0] sm:$0xff] }
 0x372   :  { %1558 = vmatpush3.bf16.msra.mxu1 %v1683_v11  ;;  %763 = vperm.xlu0 %1654, %v759_v19  }
 0x373   :  { %1559 = vmatprep.subr.bf16.mxu1 %v1684_v13 }
 0x376   :  { %1560 = vmatpush3.bf16.msra.mxu1 %v1684_v13 }
 0x377   :  { %1561 = vmatprep.subr.bf16.mxu1 %v1685_v14 }
 0x37a   :  { %1562 = vmatpush3.bf16.msra.mxu1 %v1685_v14 }
 0x37b   :  { %1563 = vmatprep.subr.bf16.mxu1 %v1686_v15 }
 0x37e   :  { %1564 = vmatpush3.bf16.msra.mxu1 %v1686_v15  ;;  %v1693_v15 = vld [vmem:[#allocation2 + $0x168] sm:$0xff]  }
 0x37f   :  { %1565 = vmatprep.subr.bf16.mxu1 %v1687_v17 }
 0x382   :  { %1566 = vmatpush3.bf16.msra.mxu1 %v1687_v17 }
 0x383   :  { %1567 = vmatprep.subr.bf16.mxu1 %v1688_v16 }
 0x386   :  { %1568 = vmatpush3.bf16.msra.mxu1 %v1688_v16 }
 0x387   :  { %1569 = vmatprep.subr.bf16.mxu1 %v1689_v18 }
 0x38a   :  { %1570 = vmatpush3.bf16.msra.mxu1 %v1689_v18  ;;  %v1694_v18 = vld [vmem:[#allocation2 + $0x160] sm:$0xff]  }
 0x38b   :  { %1571 = vmatprep.subr.bf16.mxu1 %v1690_v20 }
 0x38e   :  { %1572 = vmatpush3.bf16.msra.mxu1 %v1690_v20 }
 0x38f   :  { %1577 = vmatprep.subr.bf16.mxu1 %v1792_v10 }
 0x3ed   :  { %v764_v57 = vpop.permute.xlu0 %763 }
 0x3ee   :  { %vm765_vm2 = vcmp.eq.s32.totalorder %v1911_v54, %v764_v57 }
 0x3ef   :  { %v1366_v3 = vsel %vm765_vm2, 1.0, %v1792_v10 }
 0x3f0   :  { %v768_v6 = vpack.c.bf16 %v1366_v3, %v1366_v3 }
 0x429   :  { %v590_v23 = vpop.f32.mrf.mxu1 }
 0x42a   :  { %v642_v25 = vadd.f32 %v1356_v22, %v590_v23 }
 0x42b   :  { %v1549_v24 = vpop.f32.mrf.mxu1 }
 0x42c   :  { %v646_v29 = vmax.f32 %v642_v25, 0.0  ;;  %v1696_v24 = vld [vmem:[#allocation2 + $0x150] sm:$0xff]  }
 0x42d   :  { %v593_v26 = vpop.f32.mrf.mxu1 }
 0x42e   :  { %v643_v27 = vadd.f32 %v1356_v22, %v593_v26 }
 0x42f   :  { %v1550_v28 = vpop.f32.mrf.mxu1 }
 0x430   :  { %v647_v30 = vmax.f32 %v643_v27, 0.0  ;;  %v1697_v27 = vld [vmem:[#allocation2 + $0x148] sm:$0xff]  }
 0x431   :  { %v631_v31 = vpop.f32.mrf.mxu1 }
 0x432   :  { %v650_v32 = vpack.c.bf16 %v647_v30, %v646_v29  ;;  %v644_v34 = vadd.f32 %v1356_v22, %v631_v31  ;;  %v1698_v30 = vld [vmem:[#allocation2 + $0x140] sm:$0xff]  }
 0x433   :  { %v1555_v33 = vpop.f32.mrf.mxu1 }
 0x434   :  { %1573 = vmatprep.mubr.bf16.mxu1 %v650_v32  ;;  %v648_v38 = vmax.f32 %v644_v34, 0.0  ;;  %v1706_v33 = vld [vmem:[#allocation2 + $0x100] sm:$0xff]  }
 0x435   :  { %v634_v35 = vpop.f32.mrf.mxu1  ;;  %1600 = vmatpush3.bf16.msra.mxu0 %v1706_v33 }
 0x436   :  { %v645_v36 = vadd.f32 %v1356_v22, %v634_v35  ;;  %1625 = vmatprep.subr.bf16.mxu0 %v1792_v10  ;;  %v1707_v35 = vld [vmem:[#allocation2 + $0x1b8] sm:$0xff]  }
 0x437   :  { %v1556_v37 = vpop.f32.mrf.mxu1 }
 0x438   :  { %v649_v39 = vmax.f32 %v645_v36, 0.0 }
 0x43a   :  { %v651_v40 = vpack.c.bf16 %v649_v39, %v648_v38  ;;  %v1708_v39 = vld [vmem:[#allocation2 + $0x1b0] sm:$0xff]  }
 0x43c   :  { %1574 = vmatmul.mubr.bf16.vlgmr.msra.gmra.mxu1 %v651_v40 }
 0x43d   :  { %1581 = vmatprep.mubr.msk.bf16.mxu1 %vm1793_vm0, %v1792_v10 }
 0x4fc   :  { %v1575_v48 = vpop.f32.mrf.mxu1 }
 0x4fd   :  { %v747_v52 = vadd.f32 %v1575_v48, %v1357_v49  ;;  %v1712_v48 = vld [vmem:[#allocation2 + $0x190] sm:$0xff]  }
 0x4fe   :  { %v738_v51 = vpop.f32.mrf.mxu1 }
 0x4ff   :  { %v739_v55 = vadd.f32 %v1357_v49, %v738_v51  ;;  %v755_v59 = vmax.f32 %v747_v52, 0.0  ;;  %v1714_v51 = vld [vmem:[#allocation2 + $0x180] sm:$0xff]   ;;  %v1795_v52 = vmov 1966171168  }
 0x500   :  { %v1576_v53 = vpop.f32.mrf.mxu1 }
 0x501   :  { %v750_v56 = vadd.f32 %v1576_v53, %v1357_v49  ;;  %v753_v62 = vmax.f32 %v739_v55, 0.0  ;;  %v1053_v53 = vunpack.c.l.s4 %v1795_v52  ;;  %v1056_v55 = vshrl.u32 %v760_v50, 7 }
 0x502   :  { %v741_v58 = vpop.f32.mrf.mxu1 }
 0x503   :  { %v756_v60 = vmax.f32 %v750_v56, 0.0  ;;  %v742_v61 = vadd.f32 %v1357_v49, %v741_v58  ;;  %v1713_v49 = vld [vmem:[#allocation2 + $0x188] sm:$0xff]   ;;  %v1054_v56 = vunpack.c.0.s8 %v1053_v53 }
 0x505   :  { %v758_v63 = vpack.c.bf16 %v756_v60, %v755_v59  ;;  %v754_v0 = vmax.f32 %v742_v61, 0.0  ;;  %v820_v1 = vadd.f32 %v756_v60, %v755_v59  ;;  %v1057_v57 = vsub.s32 %v1054_v56, %v1056_v55 }
 0x506   :  { %v1076_v61 = vsub.s32 0, %v1056_v55 }
 0x507   :  { %v813_v2 = vadd.f32 %v754_v0, %v753_v62  ;;  %1578 = vmatpush3.bf16.msra.mxu1 %v758_v63  ;;  %v757_v4 = vpack.c.bf16 %v754_v0, %v753_v62  ;;  %v821_v7 = vrot.slane %v820_v1, 4  ;;  %v1384_v0 = vld [vmem:[%s1975_s5 + $0x4] ss:$0 sm:$0xff] }
 0x508   :  { %1579 = vmatprep.subr.bf16.mxu1 %v1792_v10 }
 0x509   :  { %v814_v5 = vrot.slane %v813_v2, 4  ;;  %v822_v11 = vadd.f32 %v821_v7, %v820_v1  ;;  %v57_v7 = vld [vmem:[%s1975_s5 + $0x6] sm:$0xf] }
 0x50b   :  { %1580 = vmatpush3.bf16.msra.mxu1 %v757_v4  ;;  %v815_v9 = vadd.f32 %v814_v5, %v813_v2  ;;  %v823_v14 = vrot.slane %v822_v11, 2 }
 0x50c   :  { %1605 = vmatprep.subr.bf16.mxu1 %v1792_v10 }
 0x50d   :  { %v816_v13 = vrot.slane %v815_v9, 2  ;;  %v824_v16 = vadd.f32 %v823_v14, %v822_v11 }
 0x50e   :  { %1582 = vmatmul.mubr.msk.bf16.vlgmr.msra.gmra.mxu1 %vm769_vm3, %v768_v6 }
 0x50f   :  { %1606 = vmatpush3.bf16.msra.mxu1 %v1691_v8  ;;  %1621 = vmatprep.mubr.msk.bf16.mxu1 %vm1793_vm0, %v1792_v10  ;;  %v817_v17 = vadd.f32 %v816_v13, %v815_v9  ;;  %v825_v19 = vrot.slane %v824_v16, 1 }
 0x510   :  { %1607 = vmatprep.subr.bf16.mxu1 %v1792_v10 }
 0x511   :  { %v818_v20 = vrot.slane %v817_v17, 1  ;;  %v826_v23 = vadd.f32 %v825_v19, %v824_v16 }
 0x513   :  { %1608 = vmatpush3.bf16.msra.mxu1 %v1692_v12  ;;  %v819_v22 = vadd.f32 %v818_v20, %v817_v17  ;;  %v934_v26 = vpack.c.bf16 %v826_v23, %v826_v23  ;;  %v1270_v20 = vsub.s32 %v1911_v54, %v1056_v55 }
 0x514   :  { %1609 = vmatprep.subr.bf16.mxu1 %v1792_v10 }
 0x515   :  { %v933_v25 = vpack.c.bf16 %v819_v22, %v819_v22  ;;  %v955_v29 = vunpack.c.l.b16 %v934_v26  ;;  %v1385_v26 = vld [vmem:[%s1975_s5 + $0x5] ss:$0 sm:$0xff] }
 0x517   :  { %1610 = vmatpush3.bf16.msra.mxu1 %v1693_v15  ;;  %v954_v28 = vunpack.c.l.b16 %v933_v25 }
 0x518   :  { %1611 = vmatprep.subr.bf16.mxu1 %v1792_v10 }
 0x519   :  { %v957_v31 = vsel %vm956_vm4, %v955_v29, %v954_v28  ;;  %v1208_v28 = vld [vmem:[%s1973_s3] sm:$0xff] }
 0x51a   :  { %v958_v32 = vpack.c.b16 %v957_v31, %v957_v31 }
 0x51b   :  { %1612 = vmatpush3.bf16.msra.mxu1 %v1694_v18 }
 0x51c   :  { %1613 = vmatprep.subr.bf16.mxu1 %v1792_v10 }
 0x51f   :  { %1614 = vmatpush3.bf16.msra.mxu1 %v1695_v21 }
 0x520   :  { %1615 = vmatprep.subr.bf16.mxu1 %v1792_v10 }
 0x523   :  { %1616 = vmatpush3.bf16.msra.mxu1 %v1696_v24 }
 0x524   :  { %1617 = vmatprep.subr.bf16.mxu1 %v1792_v10 }
 0x527   :  { %1618 = vmatpush3.bf16.msra.mxu1 %v1697_v27 }
 0x528   :  { %1619 = vmatprep.subr.bf16.mxu1 %v1792_v10 }
 0x52b   :  { %1620 = vmatpush3.bf16.msra.mxu1 %v1698_v30 }
 0x52e   :  { %1622 = vmatmul.mubr.bf16.vlgmr.msra.gmra.mxu1 %v958_v32 }
 0x5ce   :  { %v807_v34 = vpop.f32.mrf.mxu1 }
 0x5cf   :  { %v827_v36 = vpack.c.bf16 %v807_v34, %v807_v34 }
 0x5d0   :  { %v1583_v37 = vpop.f32.mrf.mxu1 }
 0x5d1   :  { %1602 = vmatmul.mubr.bf16.vlgmr.msra.gmra.mxu0 %v827_v36 }
 0x5d2   :  { %v810_v38 = vpop.f32.mrf.mxu1  ;;  %1626 = vmatpush3.bf16.msra.mxu0 %v1707_v35  ;;  %1641 = vmatprep.mubr.msk.bf16.mxu0 %vm1793_vm0, %v1792_v10 }
 0x5d3   :  { %1627 = vmatprep.subr.bf16.mxu0 %v1792_v10 }
 0x5d4   :  { %v1584_v40 = vpop.f32.mrf.mxu1 }
 0x5d6   :  { %1628 = vmatpush3.bf16.msra.mxu0 %v1708_v39 }
 0x5d7   :  { %1629 = vmatprep.subr.bf16.mxu0 %v1792_v10 }
 0x5da   :  { %1630 = vmatpush3.bf16.msra.mxu0 %v1709_v41 }
 0x5db   :  { %1631 = vmatprep.subr.bf16.mxu0 %v1792_v10 }
 0x5de   :  { %1632 = vmatpush3.bf16.msra.mxu0 %v1710_v42 }
 0x5df   :  { %1633 = vmatprep.subr.bf16.mxu0 %v1792_v10 }
 0x5e2   :  { %1634 = vmatpush3.bf16.msra.mxu0 %v1711_v43 }
 0x5e3   :  { %1635 = vmatprep.subr.bf16.mxu0 %v1792_v10 }
 0x5e6   :  { %1636 = vmatpush3.bf16.msra.mxu0 %v1712_v48 }
 0x5e7   :  { %1637 = vmatprep.subr.bf16.mxu0 %v1792_v10 }
 0x5ea   :  { %1638 = vmatpush3.bf16.msra.mxu0 %v1713_v49 }
 0x5eb   :  { %1639 = vmatprep.subr.bf16.mxu0 %v1792_v10 }
 0x5ee   :  { %v1042_v44 = vpop.f32.mrf.mxu1  ;;  %1640 = vmatpush3.bf16.msra.mxu0 %v1714_v51 }
 0x5ef   :  { %v1058_v58 = vrot.slane %v1042_v44, %v1057_v57 }
 0x5f0   :  { %v1623_v45 = vpop.f32.mrf.mxu1 }
 0x5f1   :  { %v1059_v59 = vcombine.high %v1058_v58, %v1058_v58  ;;  %v1066_v60 = vrot.slane %v1058_v58, %v1057_v57 }
 0x5f2   :  { %v1045_v46 = vpop.f32.mrf.mxu1 }
 0x5f3   :  { %v1073_v62 = vrot.slane %v1059_v59, %v1057_v57  ;;  %v1077_v63 = vrot.slane %v1066_v60, %v1076_v61 }
 0x5f4   :  { %v1624_v47 = vpop.f32.mrf.mxu1 }
 0x5f5   :  { %v1081_v10 = vrot.slane %v1073_v62, %v1076_v61 }
 0x691   :  { %v927_v1 = vpop.f32.mrf.mxu0 }
 0x692   :  { %v1049_v2 = vcombine.high %v927_v1, %v927_v1  ;;  %v1084_v3 = vadd.f32 %v1077_v63, %v927_v1 }
 0x693   :  { %v1603_v4 = vpop.f32.mrf.mxu0 }
 0x694   :  { %v1085_v5 = vadd.f32 %v1081_v10, %v1049_v2  ;;  %v1090_v6 = vadd.f32 %v1384_v0, %v1084_v3 }
 0x695   :  { %v930_v50 = vpop.f32.mrf.mxu0 }
 0x696   :  { %v1092_v8 = vmax.f32 %v1090_v6, 0.0  ;;  %v1091_v9 = vadd.f32 %v1384_v0, %v1085_v5 }
 0x697   :  { %v1604_v11 = vpop.f32.mrf.mxu0 }
 0x698   :  { %v1258_v12 = vmul.f32 %v1092_v8, %v57_v7  ;;  %v1093_v13 = vmax.f32 %v1091_v9, 0.0 }
 0x69a   :  { %v1260_v14 = vsel %vm1214_vm5, %v1258_v12, 0.0  ;;  %v1259_v15 = vmul.f32 %v1093_v13, %v57_v7  ;;  %v1096_v17 = vcombine.low %v1092_v8, %v1093_v13 }
 0x69b   :  { %1261 = vadd.xlane.f32.xlu0 %v1260_v14 }
 0x69c   :  { %v1263_v16 = vsel %vm1214_vm5, %v1259_v15, 0.0  ;;  %v1098_v18 = vpack.c.bf16 %v1096_v17, %v1096_v17 }
 0x69d   :  { %1264 = vadd.xlane.f32.xlu1 %v1263_v16 }
 0x69e   :  { %1642 = vmatmul.mubr.bf16.vlgmr.msra.gmra.mxu0 %v1098_v18 }
 0x724   :  { %v1262_v19 = vpop.xlane.xlu0 %1261 }
 0x725   :  { %v1271_v22 = vrot.slane %v1262_v19, %v1270_v20 }
 0x726   :  { %v1265_v21 = vpop.xlane.xlu1 %1264 }
 0x727   :  { %v1275_v23 = vrot.slane %v1265_v21, %v1270_v20 }
 0x729   :  { %v1276_v24 = vsel %vm956_vm4, %v1275_v23, %v1271_v22 }
 0x72a   :  { %v1279_v25 = vsel %vm1278_vm6, %v1276_v24, 0.0 }
 0x72b   :  { %1280 = vadd.xlane.f32.xlu1 %v1279_v25 }
 0x75e   :  { %v1202_v27 = vpop.f32.mrf.mxu0 }
 0x75f   :  { %v1203_v54 = vadd.f32 %v1385_v26, %v1202_v27 }
 0x760   :  { %v1643_v29 = vpop.f32.mrf.mxu0 }
 0x761   :  { %v1209_v30 = vadd.f32 %v1208_v28, %v1203_v54 }
 0x762   :  { %v1205_v31 = vpop.f32.mrf.mxu0 }
 0x763   :  { %v1212_v32 = vcombine.high %v1209_v30, %v1209_v30  ;;  %v1215_v33 = vsel %vm1214_vm5, %v1209_v30, -inf  ;;  %1210 = vst [vmem:[#allocation5] sm:$0xff] %v1209_v30 }
 0x764   :  { %v1216_v34 = vrot.slane %v1215_v33, 4  ;;  %v1644_v35 = vpop.f32.mrf.mxu0 }
 0x765   :  { %1754 = shalt.err (!%p1751_p9)
}
 0x766   :  { %1298 = dma.vmem_to_hbm [thread:$0]  %s1296_s13, 128, %s1976_s6, [#allocation4]   ;;  %v1222_v36 = vsel %vm1214_vm5, %v1212_v32, -inf  ;;  %v1217_v37 = vmax.f32 %v1215_v33, %v1216_v34 }
 0x767   :  { %v1223_v38 = vrot.slane %v1222_v36, 4  ;;  %s1797_s6 = smov [#allocation6]  }
 0x768   :  { %v1218_v39 = vrot.slane %v1217_v37, 2  ;;  %s1305_s15 = sshll.u32 %s1797_s6, 4  ;;  %s1306_s15 = int_to_ptr.vmem [resolvable:$true] %s1305_s15 }
 0x769   :  { %v1224_v40 = vmax.f32 %v1222_v36, %v1223_v38  ;;  %s1763_s16 = scalar_lea.vmem %s1306_s15, 128  ;;  %p1768_p11 = scmp.lt.s32.totalorder %s1306_s15, %s1306_s15 }
 0x76a   :  { %v1219_v41 = vmax.f32 %v1217_v37, %v1218_v39  ;;  %p1764_p10 = scmp.ne.s32.totalorder %s1306_s15, %s1763_s16  ;;  %p1769_p12 = scmp.lt.s32.totalorder %s1763_s16, %s1763_s16 }
 0x76b   :  { %v1225_v42 = vrot.slane %v1224_v40, 2 }
 0x76c   :  { %v1220_v43 = vrot.slane %v1219_v41, 1  ;;  %p1770_p13 = por %p1769_p12, %p1768_p11 }
 0x76d   :  { %v1226_v44 = vmax.f32 %v1224_v40, %v1225_v42 }
 0x76e   :  { %v1221_v45 = vmax.f32 %v1219_v41, %v1220_v43  ;;  %p1771_p0 = pnand %p1770_p13, %p1764_p10 }
 0x76f   :  { %v1227_v46 = vrot.slane %v1226_v44, 1 }
 0x770   :  { %v1229_v48 = vsub.f32 %v1209_v30, %v1221_v45 }
 0x771   :  { %v1228_v47 = vmax.f32 %v1226_v44, %v1227_v46 }
 0x772   :  { %v1231_v51 = vmul.f32 1.442695, %v1229_v48 }
 0x773   :  { %v1230_v49 = vsub.f32 %v1212_v32, %v1228_v47 }
 0x774   :  { %1715 = vpow2.f32 %v1231_v51 }
 0x775   :  { %v1233_v52 = vmul.f32 1.442695, %v1230_v49 }
 0x777   :  { %1717 = vpow2.f32 %v1233_v52 }
 0x781   :  { %v1716_v53 = vpop.eup %1715 }
 0x782   :  { %v1235_v55 = vsel %vm1214_vm5, %v1716_v53, 0.0 }
 0x783   :  { %v1236_v57 = vrot.slane %v1235_v55, 4 }
 0x784   :  { %v1718_v56 = vpop.eup %1717 }
 0x785   :  { %v1242_v58 = vsel %vm1214_vm5, %v1718_v56, 0.0  ;;  %v1237_v59 = vadd.f32 %v1236_v57, %v1235_v55 }
 0x786   :  { %v1243_v60 = vrot.slane %v1242_v58, 4 }
 0x787   :  { %v1238_v61 = vrot.slane %v1237_v59, 2 }
 0x788   :  { %v1244_v62 = vadd.f32 %v1243_v60, %v1242_v58 }
 0x789   :  { %v1239_v63 = vadd.f32 %v1238_v61, %v1237_v59 }
 0x78a   :  { %v1245_v0 = vrot.slane %v1244_v62, 2 }
 0x78b   :  { %v1240_v1 = vrot.slane %v1239_v63, 1 }
 0x78c   :  { %v1246_v2 = vadd.f32 %v1245_v0, %v1244_v62 }
 0x78d   :  { %v1241_v10 = vadd.f32 %v1240_v1, %v1239_v63 }
 0x78e   :  { %v1247_v3 = vrot.slane %v1246_v2, 1 }
 0x78f   :  { %1719 = vrcp.f32 %v1241_v10 }
 0x790   :  { %v1248_v4 = vadd.f32 %v1247_v3, %v1246_v2 }
 0x792   :  { %1721 = vrcp.f32 %v1248_v4 }
 0x79c   :  { %v1720_v5 = vpop.eup %1719 }
 0x79d   :  { %v1250_v50 = vmul.f32 %v1720_v5, %v1716_v53 }
 0x79f   :  { %v1722_v6 = vpop.eup %1721 }
 0x7a0   :  { %v1252_v7 = vmul.f32 %v1722_v6, %v1718_v56 }
 0x7a2   :  { %v1255_v8 = vcombine.low %v1250_v50, %v1252_v7 }
 0x7a4   :  { %1257 = vst [vmem:[#allocation6] sm:$0xff] %v1255_v8 }
 0x7a5   :  { %1774 = shalt.err (!%p1771_p0)
}
 0x7a6   :  { %1308 = dma.vmem_to_hbm [thread:$0]  %s1306_s15, 128, %s1977_s7, [#allocation7]   ;;  %v1394_v9 = vld [vmem:[%s1975_s5 + $0xa] ss:$0 sm:$0xff]  ;;  %vm1287_vm7 = vcmask 1024  }
 0x7b4   :  { %v1281_v11 = vpop.xlane.xlu1 %1280 }
 0x7b5   :  { %v1286_v12 = vadd.f32 %v1394_v9, %v1281_v11 }
 0x7b7   :  { %1288 = vst.msk [vmem:[%s1978_s8] sm:$0x3] %vm1287_vm7, %v1286_v12 }
 0x7b8   :  { %1785 = dma.done.wait [#allocation4], 128  }
 0x7b9   :  { %1786 = vsyncadd [#allocation4], 4294967168 }
 0x7ba   :  { %1787 = dma.done.wait [#allocation7], 128  }
 0x7bb   :  { %1788 = vsyncadd [#allocation7], 4294967168 }
 0x7bc   :  { %1319 = vsyncpa [#allocation3], 1 }
 0x7bd   :  { %1320 = vsyncpa [#allocation4], 1 }
 0x7be   :  { %1321 = vsyncpa [#allocation7], 1 }

</bundles_post_ra>
